<compile_context>
chip_gen: v7x
topology: tpu7x:2x2x1
jax: 0.10.0
libtpu: 0.0.40
codegen_flags: <defaults>
</compile_context>

<pallas_src>
import functools
import math

import jax
import jax.numpy as jnp
from jax.experimental import pallas as pl
from jax.experimental.pallas import tpu as pltpu

_LANE = 128


def _round_up(x, m):
    return (x + m - 1) // m * m


def _vmem_budget_bytes():
    """Per-core VMEM budget with compiler headroom (generation-aware)."""
    try:
        cap = int(pltpu.get_tpu_info().vmem_capacity_bytes)
    except Exception:
        cap = 64 << 20  # conservative default (v7x per-TensorCore VMEM)
    headroom = max(8 << 20, cap // 8)
    return max(min(cap - headroom, 100 << 20), 24 << 20)


def _gelu(h, approx):
    if approx:
        # tanh approximation: single EUP op, frees VPU slots (numerics differ
        # slightly from torch.nn.GELU default).
        return jax.nn.gelu(h, approximate=True)
    # exact erf GELU == torch.nn.GELU() default
    return 0.5 * h * (1.0 + jax.lax.erf(h * (2.0 ** -0.5)))


# ------------------------------- kernels -------------------------------------

def _mlp_kernel_resident(x_ref, w1_ref, b1_ref, w2_ref, b2_ref, o_ref, h_ref,
                         *, approx_gelu):
    """Full hidden dim resident in VMEM; grid = (row tiles, c_out tiles)."""
    j = pl.program_id(1)

    @pl.when(j == 0)  # hidden activations computed once per row tile
    def _():
        h = jnp.dot(x_ref[...].astype(w1_ref.dtype), w1_ref[...],
                    preferred_element_type=jnp.float32)
        h = h + b1_ref[...]                       # f32 bias
        h_ref[...] = _gelu(h, approx_gelu).astype(h_ref.dtype)

    out = jnp.dot(h_ref[...], w2_ref[...], preferred_element_type=jnp.float32)
    o_ref[...] = (out + b2_ref[...]).astype(o_ref.dtype)


def _mlp_kernel_chunked(x_ref, w1_ref, b1_ref, w2_ref, b2_ref, o_ref, acc_ref,
                        *, approx_gelu):
    """Hidden dim chunked; grid = (row tiles, c_out tiles, hidden chunks)."""
    k = pl.program_id(2)

    h = jnp.dot(x_ref[...].astype(w1_ref.dtype), w1_ref[...],
                preferred_element_type=jnp.float32)
    h = _gelu(h + b1_ref[...], approx_gelu)
    part = jnp.dot(h.astype(w2_ref.dtype), w2_ref[...],
                   preferred_element_type=jnp.float32)

    @pl.when(k == 0)      # write first partial directly (no zero-init pass)
    def _():
        acc_ref[...] = part

    @pl.when(k > 0)
    def _():
        acc_ref[...] += part

    @pl.when(k == pl.num_programs(2) - 1)
    def _():
        o_ref[...] = (acc_ref[...] + b2_ref[...]).astype(o_ref.dtype)


# ------------------------------- module --------------------------------------

class PallasMLP:
    """Fused MLP forward.  Weights stored transposed vs torch:
    w1: [C_in, H], b1: [H], w2: [H, C_out], b2: [C_out]."""

    def __init__(self, w1, b1, w2, b2, *, compute_dtype=None, approx_gelu=False):
        self.c_in, self.hidden = (int(s) for s in w1.shape)
        self.c_out = int(w2.shape[1])
        self.approx_gelu = bool(approx_gelu)
        # compute_dtype=jnp.bfloat16 runs both matmuls at full MXU rate with
        # f32 accumulation (optional; default keeps the weight dtype / parity).
        self.param_dtype = jnp.dtype(compute_dtype if compute_dtype is not None
                                     else w1.dtype)

        self.c_in_p = _round_up(self.c_in, _LANE)
        self.h_p = _round_up(self.hidden, _LANE)
        self.c_out_p = _round_up(self.c_out, _LANE)

        # Pad + cast parameters ONCE (hoisted out of the per-call path).
        self.w1_p = jnp.pad(jnp.asarray(w1, self.param_dtype),
                            ((0, self.c_in_p - self.c_in),
                             (0, self.h_p - self.hidden)))
        self.b1_p = jnp.pad(jnp.asarray(b1, jnp.float32).reshape(1, -1),
                            ((0, 0), (0, self.h_p - self.hidden)))
        self.w2_p = jnp.pad(jnp.asarray(w2, self.param_dtype),
                            ((0, self.h_p - self.hidden),
                             (0, self.c_out_p - self.c_out)))
        self.b2_p = jnp.pad(jnp.asarray(b2, jnp.float32).reshape(1, -1),
                            ((0, 0), (0, self.c_out_p - self.c_out)))

        self._budget = _vmem_budget_bytes()
        self._fns = {}

    # ------------------------- tiling plan -----------------------------------
    def _plan(self, m, act_dtype):
        itemsize = jnp.dtype(act_dtype).itemsize
        w_item = jnp.dtype(self.param_dtype).itemsize
        c_in_p, h_p, c_out_p = self.c_in_p, self.h_p, self.c_out_p
        budget = self._budget

        # dtype-appropriate sublane multiple for the row tile
        row_mult = {4: 8, 2: 16, 1: 32}.get(itemsize, 8)
        m_r = _round_up(max(m, 1), row_mult)
        tm_cap = 512 if budget >= (80 << 20) else 256      # v5e/v6e vs v7x
        tm_top = min(tm_cap, m_r)
        # keep >= 2 row tiles so the "parallel" M axis feeds both v7x cores
        if m_r > row_mult and m_r // tm_top < 2:
            tm_top = _round_up((m_r + 1) // 2, row_mult)
        tm_min = min(tm_top, max(row_mult, 64))
        tm_cands, t = [], tm_top
        while True:
            tm_cands.append(t)
            if t <= tm_min:
                break
            t = max(tm_min, _round_up(t // 2, row_mult))

        def _chunks(total):
            c = [total]
            for d in (2048, 1024, 512, 256, 128):
                if d < total and total % d == 0:
                    c.append(d)
            return c

        def _fits(tm, tn, th, k_tiles):
            # conservative: assume every block is double-buffered
            b = 2 * itemsize * (tm * c_in_p + tm * tn)        # x / out tiles
            b += 2 * w_item * (c_in_p * th + th * tn)         # w1 / w2 blocks
            b += 2 * 4 * (th + tn)                            # f32 biases
            b += (w_item if k_tiles == 1 else 4) * tm * th    # h cache / temp
            if k_tiles > 1:
                b += 4 * tm * tn                              # f32 accumulator
            return b <= budget

        # Preference: full-H resident > resident-H with c_out tiles > chunked H.
        for th in _chunks(h_p):
            k_tiles = h_p // th
            for tn in _chunks(c_out_p):
                for tm in tm_cands:
                    if _fits(tm, tn, th, k_tiles):
                        return tm, tn, th
        # TODO(synk): c_in is never tiled; add a C_in reduction axis for
        # extremely large in_features where even the smallest config misses.
        return tm_cands[-1], 128, 128

    # ----------------------- pallas_call builder ------------------------------
    def _make_fn(self, m, act_dtype, cfg, single_buffer):
        tm, tn, th = cfg
        m_p = _round_up(m, tm)
        c_in, c_out, hid = self.c_in, self.c_out, self.hidden
        c_in_p, h_p, c_out_p = self.c_in_p, self.h_p, self.c_out_p
        n_tiles, k_tiles = c_out_p // tn, h_p // th
        resident = k_tiles == 1
        wdt = self.param_dtype
        itemsize = jnp.dtype(act_dtype).itemsize

        def spec(shape, index_map, invariant=False):
            if invariant and single_buffer and hasattr(pl, "Buffered"):
                # grid-invariant block: fetched once, no double buffer
                return pl.BlockSpec(shape, index_map,
                                    pipeline_mode=pl.Buffered(1))
            return pl.BlockSpec(shape, index_map)

        if resident:
            kernel = functools.partial(_mlp_kernel_resident,
                                       approx_gelu=self.approx_gelu)
            grid = (m_p // tm, n_tiles)
            in_specs = [
                spec((tm, c_in_p), lambda i, j: (i, 0)),                     # x
                spec((c_in_p, h_p), lambda i, j: (0, 0), invariant=True),    # w1
                spec((1, h_p), lambda i, j: (0, 0), invariant=True),         # b1
                spec((h_p, tn), lambda i, j: (0, j), invariant=n_tiles == 1),# w2
                spec((1, tn), lambda i, j: (0, j), invariant=n_tiles == 1),  # b2
            ]
            out_specs = pl.BlockSpec((tm, tn), lambda i, j: (i, j))
            scratch = [pltpu.VMEM((tm, h_p), wdt)]       # GELU(h) cache
            dim_sem = ("parallel", "arbitrary")
        else:
            kernel = functools.partial(_mlp_kernel_chunked,
                                       approx_gelu=self.approx_gelu)
            grid = (m_p // tm, n_tiles, k_tiles)
            in_specs = [
                spec((tm, c_in_p), lambda i, j, k: (i, 0)),   # x
                spec((c_in_p, th), lambda i, j, k: (0, k)),   # w1 chunk
                spec((1, th), lambda i, j, k: (0, k)),        # b1 chunk
                spec((th, tn), lambda i, j, k: (k, j)),       # w2 chunk
                spec((1, tn), lambda i, j, k: (0, j)),        # b2
            ]
            out_specs = pl.BlockSpec((tm, tn), lambda i, j, k: (i, j))
            scratch = [pltpu.VMEM((tm, tn), jnp.float32)]    # f32 accumulator
            dim_sem = ("parallel", "parallel", "arbitrary")

        cost = pl.CostEstimate(
            flops=int(2 * m * (c_in * hid + hid * c_out)),
            transcendentals=int(m * hid),
            bytes_accessed=int(itemsize * m * (c_in + c_out)
                               + jnp.dtype(wdt).itemsize
                               * (c_in * hid + hid * c_out)
                               + 4 * (hid + c_out)),
        )

        call = pl.pallas_call(
            kernel,
            out_shape=jax.ShapeDtypeStruct((m_p, c_out_p), act_dtype),
            grid=grid,
            in_specs=in_specs,
            out_specs=out_specs,
            scratch_shapes=scratch,
            compiler_params=pltpu.CompilerParams(
                dimension_semantics=dim_sem,
                vmem_limit_bytes=int(self._budget)),
            cost_estimate=cost,
        )

        pad_m, pad_c = m_p - m, c_in_p - c_in

        @jax.jit
        def fn(x2d, w1p, b1p, w2p, b2p):
            x_pad = jnp.pad(x2d, ((0, pad_m), (0, pad_c)))   # only x per call
            out = call(x_pad, w1p, b1p, w2p, b2p)
            return out[:m, :c_out]

        return fn

    # ------------------------------ forward -----------------------------------
    def __call__(self, x):
        if x.shape[-1] != self.c_in:
            raise ValueError("last dim of x must equal in_features")
        lead = x.shape[:-1]
        m = int(math.prod(lead))
        x2d = x.reshape(m, self.c_in)
        key = (m, str(x2d.dtype))
        fn = self._fns.get(key)
        if fn is None:
            cfg = self._plan(m, x2d.dtype)
            attempts = (True, False) if hasattr(pl, "Buffered") else (False,)
            err = None
            for single_buffer in attempts:
                try:
                    cand = self._make_fn(m, x2d.dtype, cfg, single_buffer)
                    out2d = jax.block_until_ready(
                        cand(x2d, self.w1_p, self.b1_p, self.w2_p, self.b2_p))
                    self._fns[key] = cand
                    return out2d.reshape(lead + (self.c_out,))
                except Exception as e:   # retry without the single-buffer hint
                    err = e
            raise err
        out2d = fn(x2d, self.w1_p, self.b1_p, self.w2_p, self.b2_p)
        return out2d.reshape(lead + (self.c_out,))


# ------------------------------ utilities -------------------------------------

def init_mlp_params(key, in_features, hidden_features=None, out_features=None,
                    dtype=jnp.float32):
    """Deterministic init mirroring nn.Linear's uniform(-1/sqrt(fan_in), ...)."""
    hidden_features = hidden_features or in_features
    out_features = out_features or in_features
    k1, k2, k3, k4 = jax.random.split(key, 4)
    lim1 = 1.0 / jnp.sqrt(in_features)
    lim2 = 1.0 / jnp.sqrt(hidden_features)
    # stored transposed vs torch ([in, out]) so the kernel does x @ w directly
    w1 = jax.random.uniform(k1, (in_features, hidden_features), dtype,
                            minval=-lim1, maxval=lim1)
    b1 = jax.random.uniform(k2, (hidden_features,), dtype,
                            minval=-lim1, maxval=lim1)
    w2 = jax.random.uniform(k3, (hidden_features, out_features), dtype,
                            minval=-lim2, maxval=lim2)
    b2 = jax.random.uniform(k4, (out_features,), dtype,
                            minval=-lim2, maxval=lim2)
    return w1, b1, w2, b2


def _mlp_reference(x, w1, b1, w2, b2):
    h = x @ w1 + b1
    h = 0.5 * h * (1.0 + jax.lax.erf(h / jnp.sqrt(2.0)))
    return h @ w2 + b2


if __name__ == "__main__":
    key = jax.random.PRNGKey(0)
    kx1, kp1, kx2, kp2 = jax.random.split(key, 4)

    # --- test 1: small shapes consistent with the module -----------------------
    batch, seq, c_in, hid, c_out = 2, 8, 32, 64, 32
    x = jax.random.normal(kx1, (batch, seq, c_in), dtype=jnp.float32)
    w1, b1, w2, b2 = init_mlp_params(kp1, c_in, hid, c_out)

    mlp = PallasMLP(w1, b1, w2, b2)
    out = mlp(x)
    jax.block_until_ready(out)

    ref = _mlp_reference(x, w1, b1, w2, b2)
    assert out.shape == (batch, seq, c_out)
    assert jnp.allclose(out, ref, atol=1e-4, rtol=1e-4), float(
        jnp.max(jnp.abs(out - ref)))

    # --- test 2: non-128-aligned dims + multiple M row tiles -------------------
    nb, ns, ci2, h2, co2 = 3, 100, 48, 96, 40
    x2 = jax.random.normal(kx2, (nb, ns, ci2), dtype=jnp.float32)
    w1b, b1b, w2b, b2b = init_mlp_params(kp2, ci2, h2, co2)

    mlp2 = PallasMLP(w1b, b1b, w2b, b2b)
    out2 = mlp2(x2)
    jax.block_until_ready(out2)

    ref2 = _mlp_reference(x2, w1b, b1b, w2b, b2b)
    assert out2.shape == (nb, ns, co2)
    assert jnp.allclose(out2, ref2, atol=1e-4, rtol=1e-4), float(
        jnp.max(jnp.abs(out2 - ref2)))

    print("KERNEL_OK")
</pallas_src>

<mosaic_0001>
module attributes {stable_mosaic.version = 11 : i64} {
  func.func @_mlp_kernel_resident(%arg0: i32, %arg1: i32, %arg2: memref<8x128xf32, #tpu.memory_space<vmem>>, %arg3: memref<128x128xf32, #tpu.memory_space<vmem>>, %arg4: memref<1x128xf32, #tpu.memory_space<vmem>>, %arg5: memref<128x128xf32, #tpu.memory_space<vmem>>, %arg6: memref<1x128xf32, #tpu.memory_space<vmem>>, %arg7: memref<8x128xf32, #tpu.memory_space<vmem>>, %arg8: memref<8x128xf32, #tpu.memory_space<vmem>>) attributes {dimension_semantics = [#tpu.dimension_semantics<parallel>, #tpu.dimension_semantics<arbitrary>], iteration_bounds = array<i64: 2, 1>, scalar_prefetch = 0 : i64, scratch_operands = 1 : i64, tpu.core_type = #tpu.core_type<tc>, window_params = [{transform_indices = @transform_0, window_bounds = array<i64: 8, 128>}, {pipeline_mode = #tpu.pipeline_mode<synchronous>, transform_indices = @transform_1, window_bounds = array<i64: 128, 128>}, {pipeline_mode = #tpu.pipeline_mode<synchronous>, transform_indices = @transform_2, window_bounds = array<i64: 1, 128>}, {pipeline_mode = #tpu.pipeline_mode<synchronous>, transform_indices = @transform_3, window_bounds = array<i64: 128, 128>}, {pipeline_mode = #tpu.pipeline_mode<synchronous>, transform_indices = @transform_4, window_bounds = array<i64: 1, 128>}, {transform_indices = @transform_5, window_bounds = array<i64: 8, 128>}]} {
    %c0_i32 = arith.constant 0 : i32
    %0 = arith.cmpi eq, %arg1, %c0_i32 : i32
    %1 = arith.extui %0 : i1 to i32
    %c0_i32_0 = arith.constant 0 : i32
    %2 = arith.cmpi ne, %1, %c0_i32_0 : i32
    scf.if %2 {
      %c0_8 = arith.constant 0 : index
      %c0_9 = arith.constant 0 : index
      %10 = vector.load %arg2[%c0_8, %c0_9] : memref<8x128xf32, #tpu.memory_space<vmem>>, vector<8x128xf32>
      %c0_10 = arith.constant 0 : index
      %c0_11 = arith.constant 0 : index
      %11 = vector.load %arg3[%c0_10, %c0_11] : memref<128x128xf32, #tpu.memory_space<vmem>>, vector<128x128xf32>
      %cst_12 = arith.constant dense<0.000000e+00> : vector<8x128xf32>
      %12 = tpu.matmul %10, %11, %cst_12 {dimension_numbers = #tpu.dot_dimension_numbers<[1], [0], [0], [1], [0, 0, 1, 1], [], []>} : vector<8x128xf32>, vector<128x128xf32>, vector<8x128xf32> -> vector<8x128xf32>
      %c0_13 = arith.constant 0 : index
      %c0_14 = arith.constant 0 : index
      %13 = vector.load %arg4[%c0_13, %c0_14] : memref<1x128xf32, #tpu.memory_space<vmem>>, vector<1x128xf32>
      %14 = vector.broadcast %13 : vector<1x128xf32> to vector<8x128xf32>
      %15 = arith.addf %12, %14 : vector<8x128xf32>
      %cst_15 = arith.constant 5.000000e-01 : f32
      %16 = vector.broadcast %cst_15 : f32 to vector<8x128xf32>
      %17 = arith.mulf %16, %15 : vector<8x128xf32>
      %cst_16 = arith.constant 0.707106769 : f32
      %18 = vector.broadcast %cst_16 : f32 to vector<8x128xf32>
      %19 = arith.mulf %15, %18 : vector<8x128xf32>
      %20 = math.erf %19 : vector<8x128xf32>
      %cst_17 = arith.constant 1.000000e+00 : f32
      %21 = vector.broadcast %cst_17 : f32 to vector<8x128xf32>
      %22 = arith.addf %21, %20 : vector<8x128xf32>
      %23 = arith.mulf %17, %22 : vector<8x128xf32>
      %c0_18 = arith.constant 0 : index
      %c0_19 = arith.constant 0 : index
      %24 = vector.load %arg8[%c0_18, %c0_19] : memref<8x128xf32, #tpu.memory_space<vmem>>, vector<8x128xf32>
      tpu.vector_store %arg8[%c0_18, %c0_19], %23 {strides = array<i32>} : memref<8x128xf32, #tpu.memory_space<vmem>>, vector<8x128xf32>,
    } else {
    }
    %c0 = arith.constant 0 : index
    %c0_1 = arith.constant 0 : index
    %3 = vector.load %arg8[%c0, %c0_1] : memref<8x128xf32, #tpu.memory_space<vmem>>, vector<8x128xf32>
    %c0_2 = arith.constant 0 : index
    %c0_3 = arith.constant 0 : index
    %4 = vector.load %arg5[%c0_2, %c0_3] : memref<128x128xf32, #tpu.memory_space<vmem>>, vector<128x128xf32>
    %cst = arith.constant dense<0.000000e+00> : vector<8x128xf32>
    %5 = tpu.matmul %3, %4, %cst {dimension_numbers = #tpu.dot_dimension_numbers<[1], [0], [0], [1], [0, 0, 1, 1], [], []>} : vector<8x128xf32>, vector<128x128xf32>, vector<8x128xf32> -> vector<8x128xf32>
    %c0_4 = arith.constant 0 : index
    %c0_5 = arith.constant 0 : index
    %6 = vector.load %arg6[%c0_4, %c0_5] : memref<1x128xf32, #tpu.memory_space<vmem>>, vector<1x128xf32>
    %7 = vector.broadcast %6 : vector<1x128xf32> to vector<8x128xf32>
    %8 = arith.addf %5, %7 : vector<8x128xf32>
    %c0_6 = arith.constant 0 : index
    %c0_7 = arith.constant 0 : index
    %9 = vector.load %arg7[%c0_6, %c0_7] : memref<8x128xf32, #tpu.memory_space<vmem>>, vector<8x128xf32>
    tpu.vector_store %arg7[%c0_6, %c0_7], %8 {strides = array<i32>} : memref<8x128xf32, #tpu.memory_space<vmem>>, vector<8x128xf32>,
    return
  }
  func.func @transform_0(%arg0: i32, %arg1: i32) -> (i32, i32) {
    %c0_i32 = arith.constant 0 : i32
    %c0_i32_0 = arith.constant 0 : i32
    return %arg0, %c0_i32 : i32, i32
  }
  func.func @transform_1(%arg0: i32, %arg1: i32) -> (i32, i32) {
    %c0_i32 = arith.constant 0 : i32
    %c0_i32_0 = arith.constant 0 : i32
    %c0_i32_1 = arith.constant 0 : i32
    return %c0_i32, %c0_i32_0 : i32, i32
  }
  func.func @transform_2(%arg0: i32, %arg1: i32) -> (i32, i32) {
    %c0_i32 = arith.constant 0 : i32
    %c0_i32_0 = arith.constant 0 : i32
    %c0_i32_1 = arith.constant 0 : i32
    return %c0_i32, %c0_i32_0 : i32, i32
  }
  func.func @transform_3(%arg0: i32, %arg1: i32) -> (i32, i32) {
    %c0_i32 = arith.constant 0 : i32
    %c0_i32_0 = arith.constant 0 : i32
    return %c0_i32, %arg1 : i32, i32
  }
  func.func @transform_4(%arg0: i32, %arg1: i32) -> (i32, i32) {
    %c0_i32 = arith.constant 0 : i32
    %c0_i32_0 = arith.constant 0 : i32
    return %c0_i32, %arg1 : i32, i32
  }
  func.func @transform_5(%arg0: i32, %arg1: i32) -> (i32, i32) {
    %c0_i32 = arith.constant 0 : i32
    return %arg0, %arg1 : i32, i32
  }
}

module attributes {stable_mosaic.version = 11 : i64} {
  func.func @_mlp_kernel_resident(%arg0: i32, %arg1: i32, %arg2: memref<8x128xf32, #tpu.memory_space<vmem>>, %arg3: memref<128x128xf32, #tpu.memory_space<vmem>>, %arg4: memref<1x128xf32, #tpu.memory_space<vmem>>, %arg5: memref<128x128xf32, #tpu.memory_space<vmem>>, %arg6: memref<1x128xf32, #tpu.memory_space<vmem>>, %arg7: memref<8x128xf32, #tpu.memory_space<vmem>>, %arg8: memref<8x128xf32, #tpu.memory_space<vmem>>) attributes {dimension_semantics = [#tpu.dimension_semantics<parallel>, #tpu.dimension_semantics<arbitrary>], iteration_bounds = array<i64: 2, 1>, scalar_prefetch = 0 : i64, scratch_operands = 1 : i64, tpu.core_type = #tpu.core_type<tc>, window_params = [{transform_indices = @transform_0, window_bounds = array<i64: 8, 128>}, {pipeline_mode = #tpu.pipeline_mode<synchronous>, transform_indices = @transform_1, window_bounds = array<i64: 128, 128>}, {pipeline_mode = #tpu.pipeline_mode<synchronous>, transform_indices = @transform_2, window_bounds = array<i64: 1, 128>}, {transform_indices = @transform_3, window_bounds = array<i64: 128, 128>}, {transform_indices = @transform_4, window_bounds = array<i64: 1, 128>}, {transform_indices = @transform_5, window_bounds = array<i64: 8, 128>}]} {
    %c0_i32 = arith.constant 0 : i32
    %0 = arith.cmpi eq, %arg1, %c0_i32 : i32
    %1 = arith.extui %0 : i1 to i32
    %c0_i32_0 = arith.constant 0 : i32
    %2 = arith.cmpi ne, %1, %c0_i32_0 : i32
    scf.if %2 {
      %c0_8 = arith.constant 0 : index
      %c0_9 = arith.constant 0 : index
      %10 = vector.load %arg2[%c0_8, %c0_9] : memref<8x128xf32, #tpu.memory_space<vmem>>, vector<8x128xf32>
      %c0_10 = arith.constant 0 : index
      %c0_11 = arith.constant 0 : index
      %11 = vector.load %arg3[%c0_10, %c0_11] : memref<128x128xf32, #tpu.memory_space<vmem>>, vector<128x128xf32>
      %cst_12 = arith.constant dense<0.000000e+00> : vector<8x128xf32>
      %12 = tpu.matmul %10, %11, %cst_12 {dimension_numbers = #tpu.dot_dimension_numbers<[1], [0], [0], [1], [0, 0, 1, 1], [], []>} : vector<8x128xf32>, vector<128x128xf32>, vector<8x128xf32> -> vector<8x128xf32>
      %c0_13 = arith.constant 0 : index
      %c0_14 = arith.constant 0 : index
      %13 = vector.load %arg4[%c0_13, %c0_14] : memref<1x128xf32, #tpu.memory_space<vmem>>, vector<1x128xf32>
      %14 = vector.broadcast %13 : vector<1x128xf32> to vector<8x128xf32>
      %15 = arith.addf %12, %14 : vector<8x128xf32>
      %cst_15 = arith.constant 5.000000e-01 : f32
      %16 = vector.broadcast %cst_15 : f32 to vector<8x128xf32>
      %17 = arith.mulf %16, %15 : vector<8x128xf32>
      %cst_16 = arith.constant 0.707106769 : f32
      %18 = vector.broadcast %cst_16 : f32 to vector<8x128xf32>
      %19 = arith.mulf %15, %18 : vector<8x128xf32>
      %20 = math.erf %19 : vector<8x128xf32>
      %cst_17 = arith.constant 1.000000e+00 : f32
      %21 = vector.broadcast %cst_17 : f32 to vector<8x128xf32>
      %22 = arith.addf %21, %20 : vector<8x128xf32>
      %23 = arith.mulf %17, %22 : vector<8x128xf32>
      %c0_18 = arith.constant 0 : index
      %c0_19 = arith.constant 0 : index
      %24 = vector.load %arg8[%c0_18, %c0_19] : memref<8x128xf32, #tpu.memory_space<vmem>>, vector<8x128xf32>
      tpu.vector_store %arg8[%c0_18, %c0_19], %23 {strides = array<i32>} : memref<8x128xf32, #tpu.memory_space<vmem>>, vector<8x128xf32>,
    } else {
    }
    %c0 = arith.constant 0 : index
    %c0_1 = arith.constant 0 : index
    %3 = vector.load %arg8[%c0, %c0_1] : memref<8x128xf32, #tpu.memory_space<vmem>>, vector<8x128xf32>
    %c0_2 = arith.constant 0 : index
    %c0_3 = arith.constant 0 : index
    %4 = vector.load %arg5[%c0_2, %c0_3] : memref<128x128xf32, #tpu.memory_space<vmem>>, vector<128x128xf32>
    %cst = arith.constant dense<0.000000e+00> : vector<8x128xf32>
    %5 = tpu.matmul %3, %4, %cst {dimension_numbers = #tpu.dot_dimension_numbers<[1], [0], [0], [1], [0, 0, 1, 1], [], []>} : vector<8x128xf32>, vector<128x128xf32>, vector<8x128xf32> -> vector<8x128xf32>
    %c0_4 = arith.constant 0 : index
    %c0_5 = arith.constant 0 : index
    %6 = vector.load %arg6[%c0_4, %c0_5] : memref<1x128xf32, #tpu.memory_space<vmem>>, vector<1x128xf32>
    %7 = vector.broadcast %6 : vector<1x128xf32> to vector<8x128xf32>
    %8 = arith.addf %5, %7 : vector<8x128xf32>
    %c0_6 = arith.constant 0 : index
    %c0_7 = arith.constant 0 : index
    %9 = vector.load %arg7[%c0_6, %c0_7] : memref<8x128xf32, #tpu.memory_space<vmem>>, vector<8x128xf32>
    tpu.vector_store %arg7[%c0_6, %c0_7], %8 {strides = array<i32>} : memref<8x128xf32, #tpu.memory_space<vmem>>, vector<8x128xf32>,
    return
  }
  func.func @transform_0(%arg0: i32, %arg1: i32) -> (i32, i32) {
    %c0_i32 = arith.constant 0 : i32
    %c0_i32_0 = arith.constant 0 : i32
    return %arg0, %c0_i32 : i32, i32
  }
  func.func @transform_1(%arg0: i32, %arg1: i32) -> (i32, i32) {
    %c0_i32 = arith.constant 0 : i32
    %c0_i32_0 = arith.constant 0 : i32
    %c0_i32_1 = arith.constant 0 : i32
    return %c0_i32, %c0_i32_0 : i32, i32
  }
  func.func @transform_2(%arg0: i32, %arg1: i32) -> (i32, i32) {
    %c0_i32 = arith.constant 0 : i32
    %c0_i32_0 = arith.constant 0 : i32
    %c0_i32_1 = arith.constant 0 : i32
    return %c0_i32, %c0_i32_0 : i32, i32
  }
  func.func @transform_3(%arg0: i32, %arg1: i32) -> (i32, i32) {
    %c0_i32 = arith.constant 0 : i32
    %c0_i32_0 = arith.constant 0 : i32
    return %c0_i32, %arg1 : i32, i32
  }
  func.func @transform_4(%arg0: i32, %arg1: i32) -> (i32, i32) {
    %c0_i32 = arith.constant 0 : i32
    %c0_i32_0 = arith.constant 0 : i32
    return %c0_i32, %arg1 : i32, i32
  }
  func.func @transform_5(%arg0: i32, %arg1: i32) -> (i32, i32) {
    %c0_i32 = arith.constant 0 : i32
    return %arg0, %arg1 : i32, i32
  }
}

</mosaic_0001>

<bundles_post_ra>
// kernel: fn.1
= control target key start
LH: loop header
LB: loop body
LE: loop exit
PB: predicated region body
PF: predicated region fallthrough
CT: control target
= control target key end

     0   :  { %10 = vsyncpa [#allocation4], 0  ;;  %s1247_s0 = inlined_call_operand.vmem [shape: f32[16,128], index: 0, kind: input, shape index: {}]   ;;  %s1248_s1 = inlined_call_operand.hbm [shape: f32[128,128], index: 1, kind: input, shape index: {}]   ;;  %s1249_s2 = inlined_call_operand.vmem [shape: f32[1,128], index: 2, kind: input, shape index: {}]   ;;  %s1250_s3 = inlined_call_operand.hbm [shape: f32[128,128], index: 3, kind: input, shape index: {}]   ;;  %s1251_s4 = inlined_call_operand.vmem [shape: f32[1,128], index: 4, kind: input, shape index: {}]   ;;  %s1252_s5 = inlined_call_operand.hbm [shape: f32[16,128], index: 5, kind: output, shape index: {}]  }
   0x1   :  { %11 = vsyncpa [#allocation7], 0 }
   0x2   :  { %12 = vsyncpa [#allocation5], 0 }
   0x3   :  { %14 = vsyncpa [#allocation5 + $0x1], 0  ;;  %s1038_s18 = smov 0   ;;  %s1040_s19 = smov 0  }
   0x4   :  { %s1042_s20 = smov 0   ;;  %s1044_s21 = smov 0  }
   0x5   :  { %s1046_s22 = smov 0   ;;  %s1048_s23 = smov 0  }
   0x6 LB: > { %s603_s24 = sadd.s32 4294967295, %s998_s23   ;;  %s604_s25 = sadd.s32 4294967294, %s998_s23   ;;  %s998_s23 = sphi %s1048_s23, %s20_s23   ;;  %s994_s22 = sphi %s1046_s22, %s1273_s22   ;;  %s990_s21 = sphi %s1044_s21, %s1272_s21   ;;  %s986_s20 = sphi %s1042_s20, %s1271_s20   ;;  %s982_s19 = sphi %s1040_s19, %s1270_s19   ;;  %s978_s18 = sphi %s1038_s18, %s1269_s18  }
   0x7   : > { %s32_s26 = sadd.s32 1, %s994_s22  ;;  %s161_s27 = sadd.s32 1, %s986_s20 }
   0x8   : > { %p34_p0 = scmp.ge.s32.totalorder %s32_s26, 2  ;;  %p171_p1 = scmp.ne.s32.totalorder %s986_s20, %s982_s19 }
   0x9   : > { %p172_p2 = scmp.eq.s32.totalorder %s603_s24, 1  ;;  %p177_p3 = scmp.ne.s32.totalorder %s982_s19, %s978_s18 }
   0xa   : > { %s1275_s26 = smov (%p34_p0, %s32_s26), 0  ;;  %p178_p5 = scmp.eq.s32.totalorder %s604_s25, 1 }
   0xb   : > { %1258 = sst [smem:[#allocation12_spill]] %s1275_s26  ;;  %p1078_p4 = por %p172_p2, %p171_p1 }
   0xc   : > { %s156_s29 = ssub.s32 %s994_s22, %s1275_s26  ;;  %p605_p6 = scmp.ge.s32.totalorder %s998_s23, 1 }
   0xd   : > { %s1259_s28 = scalar_select %p1078_p4, 1, 0 }
   0xe   : > { %p159_p7 = scmp.eq.s32.totalorder %s156_s29, 0  ;;  %p1085_p8 = por %p178_p5, %p177_p3 }
   0xf   : > { %p185_p9 = scmp.lt.s32.totalorder %s998_s23, 3  ;;  %p1097_p11 = scmp.eq.s32.totalorder %s603_s24, 0 }
  0x10   : > { %s1260_s30 = scalar_select %p1085_p8, 1, 0 }
  0x11   : > { %s1091_s6 = scalar_select %p159_p7, %s986_s20, %s161_s27  }
  0x12   : > { %p1093_p10 = pnand %p605_p6, %p185_p9  ;;  %s1000_s9 = smov [#allocation3]  }
  0x13   : > { %s1262_s8 = scalar_select %p1097_p11, 1, 0 }
  0x14   : > { %s1261_s7 = scalar_select %p1093_p10, 1, 0 }
  0x15   : > { %p783_p12 = pneg %p1093_p10  ;;  %s197_s10 = sshll.u32 %s1000_s9, 4  ;;  %s198_s10 = int_to_ptr.vmem [resolvable:$true] %s197_s10 }
  0x16   : > { %s1001_s12 = smov [#allocation6]   ;;  %s856_s16 = scalar_lea.hbm %s1248_s1, 2048 }
  0x17   : > { %p1105_p13 = pnand %p1097_p11, %p783_p12  ;;  %s215_s13 = sshll.u32 %s1001_s12, 4  ;;  %s1109_s13 = int_to_ptr.vmem [resolvable:$true] %s215_s13 }
  0x18   : > { %p857_p0 = scmp.ne.s32.totalorder %s1248_s1, %s856_s16  ;;  %p863_p5 = scmp.lt.u32.totalorder %s856_s16, %s1248_s1 }
  0x19   : > { %p858_p1 = pneg %p1105_p13 }
  0x1b   : > { %p859_p2 = pnand %p858_p1, %p857_p0 }
  0x1d   : > { %p860_p3 = pneg %p859_p2 }
  0x1f   : > { %p865_p6 = pnand %p863_p5, %p860_p3 }
  0x21   : > { %868 = shalt.err (!%p865_p6)
}
  0x22   : > { %s869_s29 = scalar_lea.vmem %s198_s10, 2048  ;;  %p877_p8 = scmp.lt.s32.totalorder %s198_s10, %s198_s10 }
  0x23   : > { %p870_p7 = scmp.ne.s32.totalorder %s198_s10, %s869_s29  ;;  %p878_p4 = scmp.lt.s32.totalorder %s869_s29, %s869_s29 }
  0x25   : > { %p872_p9 = pnand %p870_p7, %p858_p1  ;;  %p879_p11 = por %p878_p4, %p877_p8 }
  0x27   : > { %p873_p12 = pneg %p872_p9 }
  0x29   : > { %p880_p10 = pnand %p879_p11, %p873_p12 }
  0x2b   : > { %883 = shalt.err (!%p880_p10)
}
  0x2c   : > { %s1002_s9 = smov 128   ;;  %s1003_s12 = smov 8  }
  0x2d   : > { %786 = dma.hbm_to_vmem [thread:$0]  (!%p1105_p13), %s1248_s1, 2048, %s198_s10, [#allocation4], %s1002_s9, %s1002_s9, %s1003_s12  }
  0x2e   : > { %s884_s24 = scalar_lea.hbm %s1250_s3, 2048 }
  0x2f   : > { %p885_p0 = scmp.ne.s32.totalorder %s1250_s3, %s884_s24  ;;  %p891_p10 = scmp.lt.u32.totalorder %s884_s24, %s1250_s3 }
  0x31   : > { %p887_p4 = pnand %p885_p0, %p858_p1 }
  0x33   : > { %p888_p8 = pneg %p887_p4 }
  0x35   : > { %p893_p11 = pnand %p891_p10, %p888_p8 }
  0x37   : > { %896 = shalt.err (!%p893_p11)
}
  0x38   : > { %s897_s10 = scalar_lea.vmem %s1109_s13, 2048  ;;  %p905_p6 = scmp.lt.s32.totalorder %s1109_s13, %s1109_s13 }
  0x39   : > { %p898_p2 = scmp.ne.s32.totalorder %s1109_s13, %s897_s10  ;;  %p906_p7 = scmp.lt.s32.totalorder %s897_s10, %s897_s10 }
  0x3b   : > { %p900_p3 = pnand %p898_p2, %p858_p1  ;;  %p907_p9 = por %p906_p7, %p905_p6 }
  0x3d   : > { %p901_p5 = pneg %p900_p3 }
  0x3f   : > { %p908_p12 = pnand %p907_p9, %p901_p5 }
  0x41   : > { %911 = shalt.err (!%p908_p12)
}
  0x42   : > { %789 = dma.hbm_to_vmem [thread:$0]  (!%p1105_p13), %s1250_s3, 2048, %s1109_s13, [#allocation7], %s1002_s9, %s1002_s9, %s1003_s12  }
  0x43   : > { %p1264_p0 = scmp.ne.s32.totalorder %s1261_s7, 0 }
  0x44   : > { %p1265_p4 = scmp.ne.s32.totalorder (!%p1264_p0), %s1262_s8, 0 }
  0x45   : > { %244 = sbr.rel (%p1264_p0) target bundleno = 573 (0x23d), region = 40 }
  0x4c   : > { %965 = dma.done.wait (%p1265_p4), [#allocation4], 2048  }
  0x4d   : > { %967 = vsyncadd (%p1265_p4), [#allocation4], 4294965248 }
  0x4e   : > { %969 = dma.done.wait (%p1265_p4), [#allocation7], 2048  }
  0x4f   : > { %971 = vsyncadd (%p1265_p4), [#allocation7], 4294965248  ;;  %v1004_v0 = vmov 0.0|0.0   ;;  %vm1005_vm0 = vmmov 0   ;;  %v1006_v1 = vmov 0.0   ;;  %v290_v2 = vld [vmem:[#allocation3] sm:$0xff] }
  0x50   : > { %725 = vmatprep.subr.bf16.mxu0 %v1004_v0  ;;  %687 = vmatprep.mubr.msk.f32.mxu0 %vm1005_vm0, %v1006_v1  ;;  %v291_v3 = vld [vmem:[#allocation3 + $0x8] sm:$0xff]  ;;  %v292_v4 = vld [vmem:[#allocation3 + $0x10] sm:$0xff]  ;;  %v293_v6 = vld [vmem:[#allocation3 + $0x18] sm:$0xff]  ;;  %p278_p13 = scmp.lt.s32.totalorder %s990_s21, 1  ;;  %s275_s16 = sand.u32 1, %s982_s19  }
  0x51   : > { %749 = vmatprep.subr.bf16.mxu1 %v1004_v0  ;;  %722 = vmatprep.mubr.msk.f32.mxu1 %vm1005_vm0, %v1006_v1  ;;  %v726_v5 = vpack.c.bf16 %v291_v3, %v290_v2  ;;  %v729_v7 = vpack.c.bf16 %v293_v6, %v292_v4  ;;  %v294_v8 = vld [vmem:[#allocation3 + $0x20] sm:$0xff]  ;;  %v295_v9 = vld [vmem:[#allocation3 + $0x28] sm:$0xff]  ;;  %v392_v12 = vld [vmem:[#allocation6 + $0x10] sm:$0xff]  ;;  %s613_s17 = sshll.u32 %s275_s16, 3  ;;  %s618_s27 = sshll.u32 %s990_s21, 7 }
  0x52   : > { %v390_v10 = vld [vmem:[#allocation6] sm:$0xff]  ;;  %v391_v11 = vld [vmem:[#allocation6 + $0x8] sm:$0xff]  ;;  %v393_v13 = vld [vmem:[#allocation6 + $0x18] sm:$0xff]  ;;  %v732_v14 = vpack.c.bf16 %v295_v9, %v294_v8  ;;  %s279_s7 = scalar_select %p278_p13, %s990_s21, 1 }
  0x53   : > { %727 = vmatpush3.bf16.msra.mxu0 %v726_v5  ;;  %v750_v15 = vpack.c.bf16 %v391_v11, %v390_v10  ;;  %v296_v16 = vld [vmem:[#allocation3 + $0x30] sm:$0xff]  ;;  %v297_v17 = vld [vmem:[#allocation3 + $0x38] sm:$0xff]  ;;  %v753_v18 = vpack.c.bf16 %v393_v13, %v392_v12  ;;  %v394_v19 = vld [vmem:[#allocation6 + $0x20] sm:$0xff]  ;;  %s277_s29 = scalar_lea.vmem [#allocation8], %s613_s17  ;;  %p1266_p8 = scmp.ne.s32.totalorder %s1259_s28, 0 }
  0x54   : > { %728 = vmatprep.subr.bf16.mxu0 %v1004_v0  ;;  %v395_v20 = vld [vmem:[#allocation6 + $0x28] sm:$0xff]  ;;  %v735_v21 = vpack.c.bf16 %v297_v17, %v296_v16  ;;  %v298_v22 = vld [vmem:[#allocation3 + $0x40] sm:$0xff]  ;;  %v300_v26 = vld [vmem:[#allocation3 + $0x50] sm:$0xff]  ;;  %s614_s8 = sshll.u32 %s279_s7, 3  ;;  %s499_s10 = sshll.u32 %s277_s29, 4  ;;  %s1202_s10 = int_to_ptr.vmem [resolvable:$true] %s499_s10 }
  0x55   : > { %751 = vmatpush3.bf16.msra.mxu1 %v750_v15  ;;  %v299_v23 = vld [vmem:[#allocation3 + $0x48] sm:$0xff]  ;;  %v756_v24 = vpack.c.bf16 %v395_v20, %v394_v19  ;;  %v301_v27 = vld [vmem:[#allocation3 + $0x58] sm:$0xff]  ;;  %v302_v29 = vld [vmem:[#allocation3 + $0x60] sm:$0xff]  ;;  %s281_s9 = scalar_lea.vmem %s1247_s0, %s614_s8  ;;  %s1200_s7 = scalar_lea.hbm %s1252_s5, %s618_s27 }
  0x56   : > { %752 = vmatprep.subr.bf16.mxu1 %v1004_v0  ;;  %v738_v25 = vpack.c.bf16 %v299_v23, %v298_v22  ;;  %v741_v28 = vpack.c.bf16 %v301_v27, %v300_v26  ;;  %v303_v30 = vld [vmem:[#allocation3 + $0x68] sm:$0xff]  ;;  %v304_v32 = vld [vmem:[#allocation3 + $0x70] sm:$0xff]  ;;  %v305_v33 = vld [vmem:[#allocation3 + $0x78] sm:$0xff]  ;;  %s485_s8 = scalar_lea.sflag [#allocation5], %s275_s16  ;;  %s912_s11 = scalar_lea.vmem %s1202_s10, 128 }
  0x57   : > { %730 = vmatpush3.bf16.msra.mxu0 %v729_v7  ;;  %v744_v31 = vpack.c.bf16 %v303_v30, %v302_v29  ;;  %v747_v34 = vpack.c.bf16 %v305_v33, %v304_v32  ;;  %v289_v35 = vld [vmem:[%s281_s9] sm:$0xff]  ;;  %v397_v37 = vld [vmem:[#allocation6 + $0x38] sm:$0xff]  ;;  %v398_v39 = vld [vmem:[#allocation6 + $0x40] sm:$0xff]  ;;  %p913_p1 = scmp.ne.s32.totalorder %s1202_s10, %s912_s11  ;;  %s1007_s21 = smov [#allocation8]  }
  0x58   : > { %731 = vmatprep.subr.bf16.mxu0 %v1004_v0  ;;  %v396_v36 = vld [vmem:[#allocation6 + $0x30] sm:$0xff]  ;;  %v399_v40 = vld [vmem:[#allocation6 + $0x48] sm:$0xff]  ;;  %v401_v43 = vld [vmem:[#allocation6 + $0x58] sm:$0xff]  ;;  %s916_s13 = sshll.u32 %s1007_s21, 4  ;;  %s917_s13 = int_to_ptr.vmem [resolvable:$false] %s916_s13 }
  0x59   : > { %754 = vmatpush3.bf16.msra.mxu1 %v753_v18  ;;  %v759_v38 = vpack.c.bf16 %v397_v37, %v396_v36  ;;  %v762_v41 = vpack.c.bf16 %v399_v40, %v398_v39  ;;  %v400_v42 = vld [vmem:[#allocation6 + $0x50] sm:$0xff]  ;;  %v402_v45 = vld [vmem:[#allocation6 + $0x60] sm:$0xff]  ;;  %v403_v46 = vld [vmem:[#allocation6 + $0x68] sm:$0xff]  ;;  %p914_p10 = pnand %p913_p1, %p1266_p8  ;;  %s918_s9 = scalar_lea.vmem %s917_s13, 256 }
  0x5a   : > { %755 = vmatprep.subr.bf16.mxu1 %v1004_v0  ;;  %v765_v44 = vpack.c.bf16 %v401_v43, %v400_v42  ;;  %v768_v47 = vpack.c.bf16 %v403_v46, %v402_v45  ;;  %v404_v48 = vld [vmem:[#allocation6 + $0x70] sm:$0xff]  ;;  %v405_v49 = vld [vmem:[#allocation6 + $0x78] sm:$0xff]  ;;  %p919_p2 = scmp.lt.s32.totalorder %s1202_s10, %s917_s13  ;;  %p920_p3 = scmp.lt.s32.totalorder %s918_s9, %s912_s11 }
  0x5b   : > { %733 = vmatpush3.bf16.msra.mxu0 %v732_v14  ;;  %v771_v50 = vpack.c.bf16 %v405_v49, %v404_v48  ;;  %v615_v51 = vld [vmem:[%s1249_s2] ss:$0 sm:$0xff]  ;;  %p915_p11 = pneg %p914_p10 }
  0x5c   : > { %734 = vmatprep.subr.bf16.mxu0 %v1004_v0  ;;  %v616_v60 = vld [vmem:[%s1251_s4] ss:$0 sm:$0xff]  ;;  %p921_p5 = por %p920_p3, %p919_p2 }
  0x5d   : > { %757 = vmatpush3.bf16.msra.mxu1 %v756_v24 }
  0x5e   : > { %758 = vmatprep.subr.bf16.mxu1 %v1004_v0  ;;  %p922_p6 = pnand %p921_p5, %p915_p11 }
  0x5f   : > { %736 = vmatpush3.bf16.msra.mxu0 %v735_v21 }
  0x60   : > { %737 = vmatprep.subr.bf16.mxu0 %v1004_v0 }
  0x61   : > { %760 = vmatpush3.bf16.msra.mxu1 %v759_v38 }
  0x62   : > { %761 = vmatprep.subr.bf16.mxu1 %v1004_v0 }
  0x63   : > { %739 = vmatpush3.bf16.msra.mxu0 %v738_v25 }
  0x64   : > { %740 = vmatprep.subr.bf16.mxu0 %v1004_v0 }
  0x65   : > { %763 = vmatpush3.bf16.msra.mxu1 %v762_v41 }
  0x66   : > { %764 = vmatprep.subr.bf16.mxu1 %v1004_v0 }
  0x67   : > { %742 = vmatpush3.bf16.msra.mxu0 %v741_v28 }
  0x68   : > { %743 = vmatprep.subr.bf16.mxu0 %v1004_v0 }
  0x69   : > { %766 = vmatpush3.bf16.msra.mxu1 %v765_v44 }
  0x6a   : > { %767 = vmatprep.subr.bf16.mxu1 %v1004_v0 }
  0x6b   : > { %745 = vmatpush3.bf16.msra.mxu0 %v744_v31 }
  0x6c   : > { %746 = vmatprep.subr.bf16.mxu0 %v1004_v0 }
  0x6d   : > { %769 = vmatpush3.bf16.msra.mxu1 %v768_v47 }
  0x6e   : > { %770 = vmatprep.subr.bf16.mxu1 %v1004_v0 }
  0x6f   : > { %748 = vmatpush3.bf16.msra.mxu0 %v747_v34 }
  0x71   : > { %772 = vmatpush3.bf16.msra.mxu1 %v771_v50 }
  0x72   : > { %688 = vmatmul.mubr.f32.vlgmr.msra.gmra.mrb[0].mxu0 %v289_v35 }
 0x145   : > { %v379_v52 = vpop.f32.mrb[0].mxu0 }
 0x146   : > { %v380_v53 = vadd.f32 %v615_v51, %v379_v52  ;;  %v689_v54 = vpop.f32.mrb[1].mxu0 }
 0x148   : > { %v384_v55 = vmul.f32 0.70710677, %v380_v53  ;;  %v383_v57 = vmul.f32 0.5, %v380_v53 }
 0x14a   : > { %854 = verf.f32 %v384_v55 }
 0x154   : > { %v855_v56 = vpop.eup %854 }
 0x155   : > { %v386_v58 = vadd.f32 1.0, %v855_v56 }
 0x157   : > { %v387_v59 = vmul.f32 %v386_v58, %v383_v57 }
 0x159   : > { %723 = vmatmul.mubr.f32.vlgmr.msra.gmra.mrb[0].mxu1 %v387_v59 }
 0x22c   : > { %v479_v61 = vpop.f32.mrb[0].mxu1 }
 0x22d   : > { %v480_v62 = vadd.f32 %v616_v60, %v479_v61  ;;  %v724_v63 = vpop.f32.mrb[1].mxu1 }
 0x22f   : > { %483 = vst [vmem:[%s277_s29] sm:$0xff] %v480_v62 }
 0x230   : > { %925 = shalt.err (!%p922_p6)
}
 0x231   : > { %s926_s12 = scalar_lea.hbm %s1200_s7, 128  ;;  %s930_s17 = scalar_lea.hbm %s1252_s5, 256 }
 0x232   : > { %p927_p7 = scmp.ne.s32.totalorder %s1200_s7, %s926_s12  ;;  %p931_p0 = scmp.lt.u32.totalorder %s1200_s7, %s1252_s5 }
 0x233   : > { %p932_p4 = scmp.lt.u32.totalorder %s930_s17, %s926_s12  ;;  %p934_p1 = scmp.lt.u32.totalorder %s926_s12, %s1200_s7 }
 0x234   : > { %p928_p9 = pnand %p927_p7, %p1266_p8 }
 0x235   : > { %p933_p13 = por %p932_p4, %p931_p0 }
 0x236   : > { %p929_p12 = pneg %p928_p9 }
 0x237   : > { %p935_p10 = por %p934_p1, %p933_p13 }
 0x239   : > { %p936_p11 = pnand %p935_p10, %p929_p12 }
 0x23b   : > { %939 = shalt.err (!%p936_p11)
}
 0x23c   : > { %781 = dma.vmem_to_hbm [thread:$0]  (%p1266_p8), %s1202_s10, 128, %s1200_s7, %s485_s8  }
 0x23d PF: > { %p798_p2 = scmp.ge.s32.totalorder %s998_s23, 2  ;;  %s511_s27 = sand.u32 1, %s978_s18  }
 0x23e   : > { %p1267_p3 = scmp.ne.s32.totalorder %s1260_s30, 0  ;;  %s512_s29 = scalar_lea.sflag [#allocation5], %s511_s27 }
 0x240   : > { %p791_p5 = pnand %p798_p2, %p1267_p3 }
 0x242   : > { %973 = dma.done.wait (!%p791_p5), %s512_s29, 128  }
 0x243   : > { %975 = vsyncadd (!%p791_p5), %s512_s29, 4294967168  ;;  %s20_s23 = sadd.s32 1, %s998_s23   ;;  %s1268_s28 = sld [smem:[#allocation12_spill]] }
 0x244   : > { %p17_p6 = scmp.ge.s32.totalorder %s20_s23, 4   ;;  %s1269_s18 = smov %s982_s19 }
 0x245   : > { %s1270_s19 = smov %s986_s20  ;;  %s1271_s20 = smov %s1091_s6 }
 0x246   : > { %s1272_s21 = smov %s994_s22  ;;  %19 = sbr.rel (!%p17_p6) target bundleno = 6 (0x6), region = 92 }
 0x249   : > { %s1273_s22 = smov %s1268_s28 }
 0x24d   :  { %517 = vsyncpa [#allocation4], 1 }
 0x24e   :  { %519 = vsyncpa [#allocation4 + $0x1], 1 }
 0x24f   :  { %520 = vsyncpa [#allocation7], 1 }
 0x250   :  { %521 = vsyncpa [#allocation5], 1 }
 0x251   :  { %523 = vsyncpa [#allocation5 + $0x1], 1 }

// kernel: fn.1
= control target key start
LH: loop header
LB: loop body
LE: loop exit
PB: predicated region body
PF: predicated region fallthrough
CT: control target
= control target key end

     0   :  { %10 = vsyncpa [#allocation4], 0  ;;  %s1247_s0 = inlined_call_operand.vmem [shape: f32[16,128], index: 0, kind: input, shape index: {}]   ;;  %s1248_s1 = inlined_call_operand.hbm [shape: f32[128,128], index: 1, kind: input, shape index: {}]   ;;  %s1249_s2 = inlined_call_operand.vmem [shape: f32[1,128], index: 2, kind: input, shape index: {}]   ;;  %s1250_s3 = inlined_call_operand.hbm [shape: f32[128,128], index: 3, kind: input, shape index: {}]   ;;  %s1251_s4 = inlined_call_operand.vmem [shape: f32[1,128], index: 4, kind: input, shape index: {}]   ;;  %s1252_s5 = inlined_call_operand.hbm [shape: f32[16,128], index: 5, kind: output, shape index: {}]  }
   0x1   :  { %11 = vsyncpa [#allocation7], 0 }
   0x2   :  { %12 = vsyncpa [#allocation5], 0 }
   0x3   :  { %14 = vsyncpa [#allocation5 + $0x1], 0  ;;  %s1038_s18 = smov 0   ;;  %s1040_s19 = smov 0  }
   0x4   :  { %s1042_s20 = smov 0   ;;  %s1044_s21 = smov 0  }
   0x5   :  { %s1046_s22 = smov 0   ;;  %s1048_s23 = smov 0  }
   0x6 LB: > { %s603_s24 = sadd.s32 4294967295, %s998_s23   ;;  %s604_s25 = sadd.s32 4294967294, %s998_s23   ;;  %s998_s23 = sphi %s1048_s23, %s20_s23   ;;  %s994_s22 = sphi %s1046_s22, %s1273_s22   ;;  %s990_s21 = sphi %s1044_s21, %s1272_s21   ;;  %s986_s20 = sphi %s1042_s20, %s1271_s20   ;;  %s982_s19 = sphi %s1040_s19, %s1270_s19   ;;  %s978_s18 = sphi %s1038_s18, %s1269_s18  }
   0x7   : > { %s32_s26 = sadd.s32 1, %s994_s22  ;;  %s161_s27 = sadd.s32 1, %s986_s20 }
   0x8   : > { %p34_p0 = scmp.ge.s32.totalorder %s32_s26, 2  ;;  %p171_p1 = scmp.ne.s32.totalorder %s986_s20, %s982_s19 }
   0x9   : > { %p172_p2 = scmp.eq.s32.totalorder %s603_s24, 1  ;;  %p177_p3 = scmp.ne.s32.totalorder %s982_s19, %s978_s18 }
   0xa   : > { %s1275_s26 = smov (%p34_p0, %s32_s26), 0  ;;  %p178_p5 = scmp.eq.s32.totalorder %s604_s25, 1 }
   0xb   : > { %1258 = sst [smem:[#allocation12_spill]] %s1275_s26  ;;  %p1078_p4 = por %p172_p2, %p171_p1 }
   0xc   : > { %s156_s29 = ssub.s32 %s994_s22, %s1275_s26  ;;  %p605_p6 = scmp.ge.s32.totalorder %s998_s23, 1 }
   0xd   : > { %s1259_s28 = scalar_select %p1078_p4, 1, 0 }
   0xe   : > { %p159_p7 = scmp.eq.s32.totalorder %s156_s29, 0  ;;  %p1085_p8 = por %p178_p5, %p177_p3 }
   0xf   : > { %p185_p9 = scmp.lt.s32.totalorder %s998_s23, 3  ;;  %p1097_p11 = scmp.eq.s32.totalorder %s603_s24, 0 }
  0x10   : > { %s1260_s30 = scalar_select %p1085_p8, 1, 0 }
  0x11   : > { %s1091_s6 = scalar_select %p159_p7, %s986_s20, %s161_s27  }
  0x12   : > { %p1093_p10 = pnand %p605_p6, %p185_p9  ;;  %s1000_s9 = smov [#allocation3]  }
  0x13   : > { %s1262_s8 = scalar_select %p1097_p11, 1, 0 }
  0x14   : > { %s1261_s7 = scalar_select %p1093_p10, 1, 0 }
  0x15   : > { %p783_p12 = pneg %p1093_p10  ;;  %s197_s10 = sshll.u32 %s1000_s9, 4  ;;  %s198_s10 = int_to_ptr.vmem [resolvable:$true] %s197_s10 }
  0x16   : > { %s1001_s12 = smov [#allocation6]   ;;  %s856_s16 = scalar_lea.hbm %s1248_s1, 2048 }
  0x17   : > { %p1105_p13 = pnand %p1097_p11, %p783_p12  ;;  %s215_s13 = sshll.u32 %s1001_s12, 4  ;;  %s1109_s13 = int_to_ptr.vmem [resolvable:$true] %s215_s13 }
  0x18   : > { %p857_p0 = scmp.ne.s32.totalorder %s1248_s1, %s856_s16  ;;  %p863_p5 = scmp.lt.u32.totalorder %s856_s16, %s1248_s1 }
  0x19   : > { %p858_p1 = pneg %p1105_p13 }
  0x1b   : > { %p859_p2 = pnand %p858_p1, %p857_p0 }
  0x1d   : > { %p860_p3 = pneg %p859_p2 }
  0x1f   : > { %p865_p6 = pnand %p863_p5, %p860_p3 }
  0x21   : > { %868 = shalt.err (!%p865_p6)
}
  0x22   : > { %s869_s29 = scalar_lea.vmem %s198_s10, 2048  ;;  %p877_p8 = scmp.lt.s32.totalorder %s198_s10, %s198_s10 }
  0x23   : > { %p870_p7 = scmp.ne.s32.totalorder %s198_s10, %s869_s29  ;;  %p878_p4 = scmp.lt.s32.totalorder %s869_s29, %s869_s29 }
  0x25   : > { %p872_p9 = pnand %p870_p7, %p858_p1  ;;  %p879_p11 = por %p878_p4, %p877_p8 }
  0x27   : > { %p873_p12 = pneg %p872_p9 }
  0x29   : > { %p880_p10 = pnand %p879_p11, %p873_p12 }
  0x2b   : > { %883 = shalt.err (!%p880_p10)
}
  0x2c   : > { %s1002_s9 = smov 128   ;;  %s1003_s12 = smov 8  }
  0x2d   : > { %786 = dma.hbm_to_vmem [thread:$0]  (!%p1105_p13), %s1248_s1, 2048, %s198_s10, [#allocation4], %s1002_s9, %s1002_s9, %s1003_s12  }
  0x2e   : > { %s884_s24 = scalar_lea.hbm %s1250_s3, 2048 }
  0x2f   : > { %p885_p0 = scmp.ne.s32.totalorder %s1250_s3, %s884_s24  ;;  %p891_p10 = scmp.lt.u32.totalorder %s884_s24, %s1250_s3 }
  0x31   : > { %p887_p4 = pnand %p885_p0, %p858_p1 }
  0x33   : > { %p888_p8 = pneg %p887_p4 }
  0x35   : > { %p893_p11 = pnand %p891_p10, %p888_p8 }
  0x37   : > { %896 = shalt.err (!%p893_p11)
}
  0x38   : > { %s897_s10 = scalar_lea.vmem %s1109_s13, 2048  ;;  %p905_p6 = scmp.lt.s32.totalorder %s1109_s13, %s1109_s13 }
  0x39   : > { %p898_p2 = scmp.ne.s32.totalorder %s1109_s13, %s897_s10  ;;  %p906_p7 = scmp.lt.s32.totalorder %s897_s10, %s897_s10 }
  0x3b   : > { %p900_p3 = pnand %p898_p2, %p858_p1  ;;  %p907_p9 = por %p906_p7, %p905_p6 }
  0x3d   : > { %p901_p5 = pneg %p900_p3 }
  0x3f   : > { %p908_p12 = pnand %p907_p9, %p901_p5 }
  0x41   : > { %911 = shalt.err (!%p908_p12)
}
  0x42   : > { %789 = dma.hbm_to_vmem [thread:$0]  (!%p1105_p13), %s1250_s3, 2048, %s1109_s13, [#allocation7], %s1002_s9, %s1002_s9, %s1003_s12  }
  0x43   : > { %p1264_p0 = scmp.ne.s32.totalorder %s1261_s7, 0 }
  0x44   : > { %p1265_p4 = scmp.ne.s32.totalorder (!%p1264_p0), %s1262_s8, 0 }
  0x45   : > { %244 = sbr.rel (%p1264_p0) target bundleno = 573 (0x23d), region = 40 }
  0x4c   : > { %965 = dma.done.wait (%p1265_p4), [#allocation4], 2048  }
  0x4d   : > { %967 = vsyncadd (%p1265_p4), [#allocation4], 4294965248 }
  0x4e   : > { %969 = dma.done.wait (%p1265_p4), [#allocation7], 2048  }
  0x4f   : > { %971 = vsyncadd (%p1265_p4), [#allocation7], 4294965248  ;;  %v1004_v0 = vmov 0.0|0.0   ;;  %vm1005_vm0 = vmmov 0   ;;  %v1006_v1 = vmov 0.0   ;;  %v290_v2 = vld [vmem:[#allocation3] sm:$0xff] }
  0x50   : > { %725 = vmatprep.subr.bf16.mxu0 %v1004_v0  ;;  %687 = vmatprep.mubr.msk.f32.mxu0 %vm1005_vm0, %v1006_v1  ;;  %v291_v3 = vld [vmem:[#allocation3 + $0x8] sm:$0xff]  ;;  %v292_v4 = vld [vmem:[#allocation3 + $0x10] sm:$0xff]  ;;  %v293_v6 = vld [vmem:[#allocation3 + $0x18] sm:$0xff]  ;;  %p278_p13 = scmp.lt.s32.totalorder %s990_s21, 1  ;;  %s275_s16 = sand.u32 1, %s982_s19  }
  0x51   : > { %749 = vmatprep.subr.bf16.mxu1 %v1004_v0  ;;  %722 = vmatprep.mubr.msk.f32.mxu1 %vm1005_vm0, %v1006_v1  ;;  %v726_v5 = vpack.c.bf16 %v291_v3, %v290_v2  ;;  %v729_v7 = vpack.c.bf16 %v293_v6, %v292_v4  ;;  %v294_v8 = vld [vmem:[#allocation3 + $0x20] sm:$0xff]  ;;  %v295_v9 = vld [vmem:[#allocation3 + $0x28] sm:$0xff]  ;;  %v392_v12 = vld [vmem:[#allocation6 + $0x10] sm:$0xff]  ;;  %s613_s17 = sshll.u32 %s275_s16, 3  ;;  %s618_s27 = sshll.u32 %s990_s21, 7 }
  0x52   : > { %v390_v10 = vld [vmem:[#allocation6] sm:$0xff]  ;;  %v391_v11 = vld [vmem:[#allocation6 + $0x8] sm:$0xff]  ;;  %v393_v13 = vld [vmem:[#allocation6 + $0x18] sm:$0xff]  ;;  %v732_v14 = vpack.c.bf16 %v295_v9, %v294_v8  ;;  %s279_s7 = scalar_select %p278_p13, %s990_s21, 1 }
  0x53   : > { %727 = vmatpush3.bf16.msra.mxu0 %v726_v5  ;;  %v750_v15 = vpack.c.bf16 %v391_v11, %v390_v10  ;;  %v296_v16 = vld [vmem:[#allocation3 + $0x30] sm:$0xff]  ;;  %v297_v17 = vld [vmem:[#allocation3 + $0x38] sm:$0xff]  ;;  %v753_v18 = vpack.c.bf16 %v393_v13, %v392_v12  ;;  %v394_v19 = vld [vmem:[#allocation6 + $0x20] sm:$0xff]  ;;  %s277_s29 = scalar_lea.vmem [#allocation8], %s613_s17  ;;  %p1266_p8 = scmp.ne.s32.totalorder %s1259_s28, 0 }
  0x54   : > { %728 = vmatprep.subr.bf16.mxu0 %v1004_v0  ;;  %v395_v20 = vld [vmem:[#allocation6 + $0x28] sm:$0xff]  ;;  %v735_v21 = vpack.c.bf16 %v297_v17, %v296_v16  ;;  %v298_v22 = vld [vmem:[#allocation3 + $0x40] sm:$0xff]  ;;  %v300_v26 = vld [vmem:[#allocation3 + $0x50] sm:$0xff]  ;;  %s614_s8 = sshll.u32 %s279_s7, 3  ;;  %s499_s10 = sshll.u32 %s277_s29, 4  ;;  %s1202_s10 = int_to_ptr.vmem [resolvable:$true] %s499_s10 }
  0x55   : > { %751 = vmatpush3.bf16.msra.mxu1 %v750_v15  ;;  %v299_v23 = vld [vmem:[#allocation3 + $0x48] sm:$0xff]  ;;  %v756_v24 = vpack.c.bf16 %v395_v20, %v394_v19  ;;  %v301_v27 = vld [vmem:[#allocation3 + $0x58] sm:$0xff]  ;;  %v302_v29 = vld [vmem:[#allocation3 + $0x60] sm:$0xff]  ;;  %s281_s9 = scalar_lea.vmem %s1247_s0, %s614_s8  ;;  %s1200_s7 = scalar_lea.hbm %s1252_s5, %s618_s27 }
  0x56   : > { %752 = vmatprep.subr.bf16.mxu1 %v1004_v0  ;;  %v738_v25 = vpack.c.bf16 %v299_v23, %v298_v22  ;;  %v741_v28 = vpack.c.bf16 %v301_v27, %v300_v26  ;;  %v303_v30 = vld [vmem:[#allocation3 + $0x68] sm:$0xff]  ;;  %v304_v32 = vld [vmem:[#allocation3 + $0x70] sm:$0xff]  ;;  %v305_v33 = vld [vmem:[#allocation3 + $0x78] sm:$0xff]  ;;  %s485_s8 = scalar_lea.sflag [#allocation5], %s275_s16  ;;  %s912_s11 = scalar_lea.vmem %s1202_s10, 128 }
  0x57   : > { %730 = vmatpush3.bf16.msra.mxu0 %v729_v7  ;;  %v744_v31 = vpack.c.bf16 %v303_v30, %v302_v29  ;;  %v747_v34 = vpack.c.bf16 %v305_v33, %v304_v32  ;;  %v289_v35 = vld [vmem:[%s281_s9] sm:$0xff]  ;;  %v397_v37 = vld [vmem:[#allocation6 + $0x38] sm:$0xff]  ;;  %v398_v39 = vld [vmem:[#allocation6 + $0x40] sm:$0xff]  ;;  %p913_p1 = scmp.ne.s32.totalorder %s1202_s10, %s912_s11  ;;  %s1007_s21 = smov [#allocation8]  }
  0x58   : > { %731 = vmatprep.subr.bf16.mxu0 %v1004_v0  ;;  %v396_v36 = vld [vmem:[#allocation6 + $0x30] sm:$0xff]  ;;  %v399_v40 = vld [vmem:[#allocation6 + $0x48] sm:$0xff]  ;;  %v401_v43 = vld [vmem:[#allocation6 + $0x58] sm:$0xff]  ;;  %s916_s13 = sshll.u32 %s1007_s21, 4  ;;  %s917_s13 = int_to_ptr.vmem [resolvable:$false] %s916_s13 }
  0x59   : > { %754 = vmatpush3.bf16.msra.mxu1 %v753_v18  ;;  %v759_v38 = vpack.c.bf16 %v397_v37, %v396_v36  ;;  %v762_v41 = vpack.c.bf16 %v399_v40, %v398_v39  ;;  %v400_v42 = vld [vmem:[#allocation6 + $0x50] sm:$0xff]  ;;  %v402_v45 = vld [vmem:[#allocation6 + $0x60] sm:$0xff]  ;;  %v403_v46 = vld [vmem:[#allocation6 + $0x68] sm:$0xff]  ;;  %p914_p10 = pnand %p913_p1, %p1266_p8  ;;  %s918_s9 = scalar_lea.vmem %s917_s13, 256 }
  0x5a   : > { %755 = vmatprep.subr.bf16.mxu1 %v1004_v0  ;;  %v765_v44 = vpack.c.bf16 %v401_v43, %v400_v42  ;;  %v768_v47 = vpack.c.bf16 %v403_v46, %v402_v45  ;;  %v404_v48 = vld [vmem:[#allocation6 + $0x70] sm:$0xff]  ;;  %v405_v49 = vld [vmem:[#allocation6 + $0x78] sm:$0xff]  ;;  %p919_p2 = scmp.lt.s32.totalorder %s1202_s10, %s917_s13  ;;  %p920_p3 = scmp.lt.s32.totalorder %s918_s9, %s912_s11 }
  0x5b   : > { %733 = vmatpush3.bf16.msra.mxu0 %v732_v14  ;;  %v771_v50 = vpack.c.bf16 %v405_v49, %v404_v48  ;;  %v615_v51 = vld [vmem:[%s1249_s2] ss:$0 sm:$0xff]  ;;  %p915_p11 = pneg %p914_p10 }
  0x5c   : > { %734 = vmatprep.subr.bf16.mxu0 %v1004_v0  ;;  %v616_v60 = vld [vmem:[%s1251_s4] ss:$0 sm:$0xff]  ;;  %p921_p5 = por %p920_p3, %p919_p2 }
  0x5d   : > { %757 = vmatpush3.bf16.msra.mxu1 %v756_v24 }
  0x5e   : > { %758 = vmatprep.subr.bf16.mxu1 %v1004_v0  ;;  %p922_p6 = pnand %p921_p5, %p915_p11 }
  0x5f   : > { %736 = vmatpush3.bf16.msra.mxu0 %v735_v21 }
  0x60   : > { %737 = vmatprep.subr.bf16.mxu0 %v1004_v0 }
  0x61   : > { %760 = vmatpush3.bf16.msra.mxu1 %v759_v38 }
  0x62   : > { %761 = vmatprep.subr.bf16.mxu1 %v1004_v0 }
  0x63   : > { %739 = vmatpush3.bf16.msra.mxu0 %v738_v25 }
  0x64   : > { %740 = vmatprep.subr.bf16.mxu0 %v1004_v0 }
  0x65   : > { %763 = vmatpush3.bf16.msra.mxu1 %v762_v41 }
  0x66   : > { %764 = vmatprep.subr.bf16.mxu1 %v1004_v0 }
  0x67   : > { %742 = vmatpush3.bf16.msra.mxu0 %v741_v28 }
  0x68   : > { %743 = vmatprep.subr.bf16.mxu0 %v1004_v0 }
  0x69   : > { %766 = vmatpush3.bf16.msra.mxu1 %v765_v44 }
  0x6a   : > { %767 = vmatprep.subr.bf16.mxu1 %v1004_v0 }
  0x6b   : > { %745 = vmatpush3.bf16.msra.mxu0 %v744_v31 }
  0x6c   : > { %746 = vmatprep.subr.bf16.mxu0 %v1004_v0 }
  0x6d   : > { %769 = vmatpush3.bf16.msra.mxu1 %v768_v47 }
  0x6e   : > { %770 = vmatprep.subr.bf16.mxu1 %v1004_v0 }
  0x6f   : > { %748 = vmatpush3.bf16.msra.mxu0 %v747_v34 }
  0x71   : > { %772 = vmatpush3.bf16.msra.mxu1 %v771_v50 }
  0x72   : > { %688 = vmatmul.mubr.f32.vlgmr.msra.gmra.mrb[0].mxu0 %v289_v35 }
 0x145   : > { %v379_v52 = vpop.f32.mrb[0].mxu0 }
 0x146   : > { %v380_v53 = vadd.f32 %v615_v51, %v379_v52  ;;  %v689_v54 = vpop.f32.mrb[1].mxu0 }
 0x148   : > { %v384_v55 = vmul.f32 0.70710677, %v380_v53  ;;  %v383_v57 = vmul.f32 0.5, %v380_v53 }
 0x14a   : > { %854 = verf.f32 %v384_v55 }
 0x154   : > { %v855_v56 = vpop.eup %854 }
 0x155   : > { %v386_v58 = vadd.f32 1.0, %v855_v56 }
 0x157   : > { %v387_v59 = vmul.f32 %v386_v58, %v383_v57 }
 0x159   : > { %723 = vmatmul.mubr.f32.vlgmr.msra.gmra.mrb[0].mxu1 %v387_v59 }
 0x22c   : > { %v479_v61 = vpop.f32.mrb[0].mxu1 }
 0x22d   : > { %v480_v62 = vadd.f32 %v616_v60, %v479_v61  ;;  %v724_v63 = vpop.f32.mrb[1].mxu1 }
 0x22f   : > { %483 = vst [vmem:[%s277_s29] sm:$0xff] %v480_v62 }
 0x230   : > { %925 = shalt.err (!%p922_p6)
}
 0x231   : > { %s926_s12 = scalar_lea.hbm %s1200_s7, 128  ;;  %s930_s17 = scalar_lea.hbm %s1252_s5, 256 }
 0x232   : > { %p927_p7 = scmp.ne.s32.totalorder %s1200_s7, %s926_s12  ;;  %p931_p0 = scmp.lt.u32.totalorder %s1200_s7, %s1252_s5 }
 0x233   : > { %p932_p4 = scmp.lt.u32.totalorder %s930_s17, %s926_s12  ;;  %p934_p1 = scmp.lt.u32.totalorder %s926_s12, %s1200_s7 }
 0x234   : > { %p928_p9 = pnand %p927_p7, %p1266_p8 }
 0x235   : > { %p933_p13 = por %p932_p4, %p931_p0 }
 0x236   : > { %p929_p12 = pneg %p928_p9 }
 0x237   : > { %p935_p10 = por %p934_p1, %p933_p13 }
 0x239   : > { %p936_p11 = pnand %p935_p10, %p929_p12 }
 0x23b   : > { %939 = shalt.err (!%p936_p11)
}
 0x23c   : > { %781 = dma.vmem_to_hbm [thread:$0]  (%p1266_p8), %s1202_s10, 128, %s1200_s7, %s485_s8  }
 0x23d PF: > { %p798_p2 = scmp.ge.s32.totalorder %s998_s23, 2  ;;  %s511_s27 = sand.u32 1, %s978_s18  }
 0x23e   : > { %p1267_p3 = scmp.ne.s32.totalorder %s1260_s30, 0  ;;  %s512_s29 = scalar_lea.sflag [#allocation5], %s511_s27 }
 0x240   : > { %p791_p5 = pnand %p798_p2, %p1267_p3 }
 0x242   : > { %973 = dma.done.wait (!%p791_p5), %s512_s29, 128  }
 0x243   : > { %975 = vsyncadd (!%p791_p5), %s512_s29, 4294967168  ;;  %s20_s23 = sadd.s32 1, %s998_s23   ;;  %s1268_s28 = sld [smem:[#allocation12_spill]] }
 0x244   : > { %p17_p6 = scmp.ge.s32.totalorder %s20_s23, 4   ;;  %s1269_s18 = smov %s982_s19 }
 0x245   : > { %s1270_s19 = smov %s986_s20  ;;  %s1271_s20 = smov %s1091_s6 }
 0x246   : > { %s1272_s21 = smov %s994_s22  ;;  %19 = sbr.rel (!%p17_p6) target bundleno = 6 (0x6), region = 92 }
 0x249   : > { %s1273_s22 = smov %s1268_s28 }
 0x24d   :  { %517 = vsyncpa [#allocation4], 1 }
 0x24e   :  { %519 = vsyncpa [#allocation4 + $0x1], 1 }
 0x24f   :  { %520 = vsyncpa [#allocation7], 1 }
 0x250   :  { %521 = vsyncpa [#allocation5], 1 }
 0x251   :  { %523 = vsyncpa [#allocation5 + $0x1], 1 }

</bundles_post_ra>
